<compile_context>
chip_gen: v7x
topology: tpu7x:2x2x1
jax: 0.10.0
libtpu: 0.0.40
codegen_flags: <defaults>
</compile_context>

<pallas_src>
import jax
import jax.numpy as jnp
from jax.experimental import pallas as pl
from jax.experimental.pallas import tpu as pltpu


def _round_up(x, m):
    return ((x + m - 1) // m) * m


def _policy_net_kernel(x_ref, w1_ref, b1_ref, w2_ref, b2_ref, o_ref):
    # Hidden layer: (TB, 4) @ (4, H_p) + (1, H_p) -> ReLU   (f32 acc on MXU).
    h = jnp.dot(x_ref[...], w1_ref[...], preferred_element_type=jnp.float32)
    h = jnp.maximum(h + b1_ref[...], 0.0)
    # Output layer: (TB, H_p) @ (H_p, 128) + (1, 128); slice to the real 2
    # logits *before* the sigmoid and write a narrow (TB, 2) block to HBM.
    z = jnp.dot(h, w2_ref[...], preferred_element_type=jnp.float32) + b2_ref[...]
    z = z[:, : o_ref.shape[-1]]
    o_ref[...] = jax.nn.sigmoid(z).astype(o_ref.dtype)


def init_params(key, input_size=4, hidden_size=56, output_size=2):
    """PyTorch nn.Linear-style init (uniform +-1/sqrt(fan_in)), stored transposed
    relative to PyTorch: W is (in_features, out_features) so y = x @ W + b."""
    k1, k2, k3, k4 = jax.random.split(key, 4)
    bound1 = 1.0 / jnp.sqrt(input_size)
    bound2 = 1.0 / jnp.sqrt(hidden_size)
    w1 = jax.random.uniform(k1, (input_size, hidden_size), jnp.float32, -bound1, bound1)
    b1 = jax.random.uniform(k2, (1, hidden_size), jnp.float32, -bound1, bound1)
    w2 = jax.random.uniform(k3, (hidden_size, output_size), jnp.float32, -bound2, bound2)
    b2 = jax.random.uniform(k4, (1, output_size), jnp.float32, -bound2, bound2)
    return w1, b1, w2, b2


def pad_params(w1, b1, w2, b2, *, hid_pad=128, out_pad=128):
    """Zero-pad hidden/output widths to lane multiples (once, at init).
    The input-feature dim (4) is NOT padded.  Zero columns/rows are inert."""
    in_dim, hid = w1.shape
    out_dim = w2.shape[1]
    hid_p = _round_up(hid, hid_pad)
    out_p = _round_up(out_dim, out_pad)
    w1p = jnp.zeros((in_dim, hid_p), w1.dtype).at[:, :hid].set(w1)
    b1p = jnp.zeros((1, hid_p), b1.dtype).at[:, :hid].set(b1)
    w2p = jnp.zeros((hid_p, out_p), w2.dtype).at[:hid, :out_dim].set(w2)
    b2p = jnp.zeros((1, out_p), b2.dtype).at[:, :out_dim].set(b2)
    return w1p, b1p, w2p, b2p


def policy_net_forward(x, w1p, b1p, w2p, b2p, *, out_dim=2, block_b=4096):
    """x: (B, 4) f32; padded params from pad_params(). Returns (B, out_dim) f32."""
    B, in_dim = x.shape
    if B == 0:
        return jnp.zeros((0, out_dim), x.dtype)

    hid_p = w1p.shape[1]
    out_p = w2p.shape[1]

    # Balanced batch tiling: num_tiles tiles of ~B/num_tiles rows (8-aligned),
    # capped at block_b rows.  For large batches force >= 2 grid steps so both
    # v7x TensorCores see work.  VMEM accounting (each 8-row block of a narrow
    # array still costs a full (8,128) f32 tile): ~2.5 KiB/row with double-
    # buffered x + out and the (TB,128) hidden temp => TB=4096 ~ 10 MiB, well
    # under the 32 MiB scoped budget on every generation (v5e/v6e/v7x).
    num_tiles = pl.cdiv(B, block_b)
    if B >= 1024 and num_tiles < 2:
        num_tiles = 2
    tb = _round_up(pl.cdiv(B, num_tiles), 8)
    b_pad = _round_up(B, tb)

    # Pad only the batch axis, and only when B is not tile-aligned.
    xp = x if b_pad == B else jnp.pad(x, ((0, b_pad - B), (0, 0)))

    out = pl.pallas_call(
        _policy_net_kernel,
        out_shape=jax.ShapeDtypeStruct((b_pad, out_dim), jnp.float32),
        grid=(b_pad // tb,),
        in_specs=[
            pl.BlockSpec((tb, in_dim), lambda i: (i, 0)),     # streamed activations
            pl.BlockSpec((in_dim, hid_p), lambda i: (0, 0)),  # VMEM-resident weights
            pl.BlockSpec((1, hid_p), lambda i: (0, 0)),
            pl.BlockSpec((hid_p, out_p), lambda i: (0, 0)),
            pl.BlockSpec((1, out_p), lambda i: (0, 0)),
        ],
        # Narrow (tb, 2) output block: last dim equals the full array dim, so
        # it is legal and the HBM writeback is 64x smaller than a 128-lane slab.
        out_specs=pl.BlockSpec((tb, out_dim), lambda i: (i, 0)),
        compiler_params=pltpu.CompilerParams(
            dimension_semantics=("parallel",),      # shard batch tiles across TCs (v7x)
            vmem_limit_bytes=32 * 1024 * 1024,
        ),
    )(xp, w1p, b1p, w2p, b2p)

    return out if b_pad == B else out[:B]


if __name__ == "__main__":
    key = jax.random.PRNGKey(0)
    k_x, k_p = jax.random.split(key)

    batch = 8
    input_size, hidden_size, output_size = 4, 56, 2

    x = jax.random.normal(k_x, (batch, input_size), dtype=jnp.float32)
    w1, b1, w2, b2 = init_params(k_p, input_size, hidden_size, output_size)
    w1p, b1p, w2p, b2p = pad_params(w1, b1, w2, b2)

    out = policy_net_forward(x, w1p, b1p, w2p, b2p, out_dim=output_size)
    out = jax.block_until_ready(out)

    # Pure-JAX reference of the unpadded forward pass.
    ref = jax.nn.sigmoid(jnp.maximum(x @ w1 + b1, 0.0) @ w2 + b2)
    assert out.shape == (batch, output_size)
    assert jnp.allclose(out, ref, atol=1e-5), "mismatch vs reference (batch=8)"

    # Ragged batch (not a multiple of 8) exercises the batch-pad/slice path.
    x5 = jax.random.normal(jax.random.PRNGKey(1), (5, input_size), dtype=jnp.float32)
    out5 = jax.block_until_ready(
        policy_net_forward(x5, w1p, b1p, w2p, b2p, out_dim=output_size))
    ref5 = jax.nn.sigmoid(jnp.maximum(x5 @ w1 + b1, 0.0) @ w2 + b2)
    assert out5.shape == (5, output_size)
    assert jnp.allclose(out5, ref5, atol=1e-5), "mismatch vs reference (batch=5)"

    # TODO(synk): REINFORCE loss / compute_returns are training-time host-side
    # utilities, not part of the forward pass; not implemented as kernels.
    print("KERNEL_OK")
</pallas_src>

<mosaic_0001>
module attributes {stable_mosaic.version = 11 : i64} {
  func.func @_policy_net_kernel(%arg0: i32, %arg1: memref<8x4xf32, #tpu.memory_space<vmem>>, %arg2: memref<4x128xf32, #tpu.memory_space<vmem>>, %arg3: memref<1x128xf32, #tpu.memory_space<vmem>>, %arg4: memref<128x128xf32, #tpu.memory_space<vmem>>, %arg5: memref<1x128xf32, #tpu.memory_space<vmem>>, %arg6: memref<8x2xf32, #tpu.memory_space<vmem>>) attributes {dimension_semantics = [#tpu.dimension_semantics<parallel>], iteration_bounds = array<i64: 1>, scalar_prefetch = 0 : i64, scratch_operands = 0 : i64, tpu.core_type = #tpu.core_type<tc>, window_params = [{transform_indices = @transform_0, window_bounds = array<i64: 8, 4>}, {pipeline_mode = #tpu.pipeline_mode<synchronous>, transform_indices = @transform_1, window_bounds = array<i64: 4, 128>}, {pipeline_mode = #tpu.pipeline_mode<synchronous>, transform_indices = @transform_2, window_bounds = array<i64: 1, 128>}, {pipeline_mode = #tpu.pipeline_mode<synchronous>, transform_indices = @transform_3, window_bounds = array<i64: 128, 128>}, {pipeline_mode = #tpu.pipeline_mode<synchronous>, transform_indices = @transform_4, window_bounds = array<i64: 1, 128>}, {transform_indices = @transform_5, window_bounds = array<i64: 8, 2>}]} {
    %c0 = arith.constant 0 : index
    %c0_0 = arith.constant 0 : index
    %0 = vector.load %arg1[%c0, %c0_0] : memref<8x4xf32, #tpu.memory_space<vmem>>, vector<8x4xf32>
    %c0_1 = arith.constant 0 : index
    %c0_2 = arith.constant 0 : index
    %1 = vector.load %arg2[%c0_1, %c0_2] : memref<4x128xf32, #tpu.memory_space<vmem>>, vector<4x128xf32>
    %cst = arith.constant dense<0.000000e+00> : vector<8x128xf32>
    %2 = tpu.matmul %0, %1, %cst {dimension_numbers = #tpu.dot_dimension_numbers<[1], [0], [0], [1], [0, 0, 1, 1], [], []>} : vector<8x4xf32>, vector<4x128xf32>, vector<8x128xf32> -> vector<8x128xf32>
    %c0_3 = arith.constant 0 : index
    %c0_4 = arith.constant 0 : index
    %3 = vector.load %arg3[%c0_3, %c0_4] : memref<1x128xf32, #tpu.memory_space<vmem>>, vector<1x128xf32>
    %4 = vector.broadcast %3 : vector<1x128xf32> to vector<8x128xf32>
    %5 = arith.addf %2, %4 : vector<8x128xf32>
    %cst_5 = arith.constant 0.000000e+00 : f32
    %6 = vector.broadcast %cst_5 : f32 to vector<8x128xf32>
    %7 = arith.maximumf %5, %6 : vector<8x128xf32>
    %c0_6 = arith.constant 0 : index
    %c0_7 = arith.constant 0 : index
    %8 = vector.load %arg4[%c0_6, %c0_7] : memref<128x128xf32, #tpu.memory_space<vmem>>, vector<128x128xf32>
    %cst_8 = arith.constant dense<0.000000e+00> : vector<8x128xf32>
    %9 = tpu.matmul %7, %8, %cst_8 {dimension_numbers = #tpu.dot_dimension_numbers<[1], [0], [0], [1], [0, 0, 1, 1], [], []>} : vector<8x128xf32>, vector<128x128xf32>, vector<8x128xf32> -> vector<8x128xf32>
    %c0_9 = arith.constant 0 : index
    %c0_10 = arith.constant 0 : index
    %10 = vector.load %arg5[%c0_9, %c0_10] : memref<1x128xf32, #tpu.memory_space<vmem>>, vector<1x128xf32>
    %11 = vector.broadcast %10 : vector<1x128xf32> to vector<8x128xf32>
    %12 = arith.addf %9, %11 : vector<8x128xf32>
    %13 = vector.extract_strided_slice %12 {offsets = [0, 0], sizes = [8, 2], strides = [1, 1]} : vector<8x128xf32> to vector<8x2xf32>
    %14 = arith.negf %13 : vector<8x2xf32>
    %15 = math.exp %14 : vector<8x2xf32>
    %cst_11 = arith.constant 1.000000e+00 : f32
    %16 = vector.broadcast %cst_11 : f32 to vector<8x2xf32>
    %17 = arith.addf %16, %15 : vector<8x2xf32>
    %18 = arith.divf %16, %17 : vector<8x2xf32>
    %c0_12 = arith.constant 0 : index
    %c0_13 = arith.constant 0 : index
    %19 = vector.load %arg6[%c0_12, %c0_13] : memref<8x2xf32, #tpu.memory_space<vmem>>, vector<8x2xf32>
    tpu.vector_store %arg6[%c0_12, %c0_13], %18 {strides = array<i32>} : memref<8x2xf32, #tpu.memory_space<vmem>>, vector<8x2xf32>,
    return
  }
  func.func @transform_0(%arg0: i32) -> (i32, i32) {
    %c0_i32 = arith.constant 0 : i32
    %c0_i32_0 = arith.constant 0 : i32
    return %arg0, %c0_i32 : i32, i32
  }
  func.func @transform_1(%arg0: i32) -> (i32, i32) {
    %c0_i32 = arith.constant 0 : i32
    %c0_i32_0 = arith.constant 0 : i32
    %c0_i32_1 = arith.constant 0 : i32
    return %c0_i32, %c0_i32_0 : i32, i32
  }
  func.func @transform_2(%arg0: i32) -> (i32, i32) {
    %c0_i32 = arith.constant 0 : i32
    %c0_i32_0 = arith.constant 0 : i32
    %c0_i32_1 = arith.constant 0 : i32
    return %c0_i32, %c0_i32_0 : i32, i32
  }
  func.func @transform_3(%arg0: i32) -> (i32, i32) {
    %c0_i32 = arith.constant 0 : i32
    %c0_i32_0 = arith.constant 0 : i32
    %c0_i32_1 = arith.constant 0 : i32
    return %c0_i32, %c0_i32_0 : i32, i32
  }
  func.func @transform_4(%arg0: i32) -> (i32, i32) {
    %c0_i32 = arith.constant 0 : i32
    %c0_i32_0 = arith.constant 0 : i32
    %c0_i32_1 = arith.constant 0 : i32
    return %c0_i32, %c0_i32_0 : i32, i32
  }
  func.func @transform_5(%arg0: i32) -> (i32, i32) {
    %c0_i32 = arith.constant 0 : i32
    %c0_i32_0 = arith.constant 0 : i32
    return %arg0, %c0_i32 : i32, i32
  }
}

</mosaic_0001>

<bundles_post_ra>
// kernel: tpu_custom_call.1
= control target key start
LH: loop header
LB: loop body
LE: loop exit
PB: predicated region body
PF: predicated region fallthrough
CT: control target
= control target key end

     0   :  { %10 = vsyncpa [#allocation3], 0  ;;  %s350_s18 = smov [#allocation2]   ;;  %s413_s0 = inlined_call_operand.vmem [shape: f32[8,4], index: 0, kind: input, shape index: {}]   ;;  %s414_s1 = inlined_call_operand.vmem [shape: f32[4,128], index: 1, kind: input, shape index: {}]   ;;  %s415_s2 = inlined_call_operand.vmem [shape: f32[1,128], index: 2, kind: input, shape index: {}]   ;;  %s416_s3 = inlined_call_operand.hbm [shape: f32[128,128], index: 3, kind: input, shape index: {}]   ;;  %s417_s4 = inlined_call_operand.vmem [shape: f32[1,128], index: 4, kind: input, shape index: {}]   ;;  %s418_s5 = inlined_call_operand.vmem [shape: f32[8,2], index: 5, kind: output, shape index: {}]  }
   0x1   :  { %s22_s19 = sshll.u32 %s350_s18, 4  ;;  %s326_s22 = scalar_lea.hbm %s416_s3, 2048  ;;  %s23_s19 = int_to_ptr.vmem [resolvable:$true] %s22_s19 }
   0x2   :  { %p327_p0 = scmp.ne.s32.totalorder %s416_s3, %s326_s22  ;;  %p330_p1 = scmp.lt.u32.totalorder %s326_s22, %s416_s3 }
   0x4   :  { %p332_p2 = pnand %p330_p1, %p327_p0 }
   0x6   :  { %335 = shalt.err (!%p332_p2)
}
   0x7   :  { %s336_s27 = scalar_lea.vmem %s23_s19, 2048  ;;  %p341_p4 = scmp.lt.s32.totalorder %s23_s19, %s23_s19 }
   0x8   :  { %p337_p3 = scmp.ne.s32.totalorder %s23_s19, %s336_s27  ;;  %p342_p5 = scmp.lt.s32.totalorder %s336_s27, %s336_s27 }
   0xa   :  { %p343_p6 = por %p342_p5, %p341_p4 }
   0xc   :  { %p344_p7 = pnand %p343_p6, %p337_p3 }
   0xe   :  { %347 = shalt.err (!%p344_p7)
}
   0xf   :  { %s351_s28 = smov 128   ;;  %s352_s29 = smov 8  }
  0x10   :  { %28 = dma.hbm_to_vmem [thread:$0]  %s416_s3, 2048, %s23_s19, [#allocation3], %s351_s28, %s351_s28, %s352_s29  }
  0x11   :  { %348 = dma.done.wait [#allocation3], 2048  }
  0x12   :  { %349 = vsyncadd [#allocation3], 4294965248  ;;  %v353_v0 = vmov 0.0   ;;  %vm354_vm0 = vmmov 0   ;;  %v355_v1 = vmov 0.0|0.0   ;;  %vm47_vm1 = vcmask 1043456  }
  0x13   :  { %252 = vmatprep.subr.mxu0 %v353_v0  ;;  %254 = vmatprep.mubr.msk.f32.mxu0 %vm354_vm0, %v353_v0  ;;  %vm43_vm2 = vcmask 31744   ;;  %v35_v2 = vld [vmem:[%s414_s1] sm:$0xf]  ;;  %v123_v5 = vld [vmem:[#allocation2 + $0x8] sm:$0xff]  ;;  %v124_v6 = vld [vmem:[#allocation2 + $0x10] sm:$0xff]  ;;  %vm221_vm3 = vcmask 15360  }
  0x14   :  { %292 = vmatprep.subr.bf16.mxu1 %v355_v1  ;;  %289 = vmatprep.mubr.msk.f32.mxu1 %vm354_vm0, %v353_v0  ;;  %v34_v3 = vld [vmem:[%s413_s0] sm:$0xff]  ;;  %v125_v7 = vld [vmem:[#allocation2 + $0x18] sm:$0xff]  ;;  %v127_v11 = vld [vmem:[#allocation2 + $0x28] sm:$0xff] }
  0x15   :  { %v122_v4 = vld [vmem:[#allocation2] sm:$0xff]  ;;  %253 = vmatpush3.msk.msra.mxu0 %vm47_vm1, %v35_v2  ;;  %v296_v9 = vpack.c.bf16 %v125_v7, %v124_v6  ;;  %v128_v13 = vld [vmem:[#allocation2 + $0x30] sm:$0xff]  ;;  %v129_v14 = vld [vmem:[#allocation2 + $0x38] sm:$0xff] }
  0x16   :  { %255 = vmatmul.mubr.msk.f32.vlgmr.msra.gmra.mrb[0].mxu0 %vm43_vm2, %v34_v3  ;;  %v293_v8 = vpack.c.bf16 %v123_v5, %v122_v4  ;;  %v126_v10 = vld [vmem:[#allocation2 + $0x20] sm:$0xff]  ;;  %v302_v15 = vpack.c.bf16 %v129_v14, %v128_v13  ;;  %v131_v17 = vld [vmem:[#allocation2 + $0x48] sm:$0xff]  ;;  %v132_v19 = vld [vmem:[#allocation2 + $0x50] sm:$0xff] }
  0x17   :  { %v299_v12 = vpack.c.bf16 %v127_v11, %v126_v10  ;;  %v130_v16 = vld [vmem:[#allocation2 + $0x40] sm:$0xff]  ;;  %v133_v20 = vld [vmem:[#allocation2 + $0x58] sm:$0xff]  ;;  %v135_v23 = vld [vmem:[#allocation2 + $0x68] sm:$0xff] }
  0x18   :  { %294 = vmatpush3.bf16.msra.mxu1 %v293_v8  ;;  %v305_v18 = vpack.c.bf16 %v131_v17, %v130_v16  ;;  %v308_v21 = vpack.c.bf16 %v133_v20, %v132_v19  ;;  %v134_v22 = vld [vmem:[#allocation2 + $0x60] sm:$0xff]  ;;  %v136_v25 = vld [vmem:[#allocation2 + $0x70] sm:$0xff]  ;;  %v137_v26 = vld [vmem:[#allocation2 + $0x78] sm:$0xff] }
  0x19   :  { %295 = vmatprep.subr.bf16.mxu1 %v355_v1  ;;  %v311_v24 = vpack.c.bf16 %v135_v23, %v134_v22  ;;  %v314_v27 = vpack.c.bf16 %v137_v26, %v136_v25  ;;  %v228_v28 = vld [vmem:[%s415_s2] ss:$0 sm:$0xff] }
  0x1a   :  { %v231_v33 = vld [vmem:[%s417_s4] ss:$0 sm:$0xff] }
  0x1c   :  { %297 = vmatpush3.bf16.msra.mxu1 %v296_v9 }
  0x1d   :  { %298 = vmatprep.subr.bf16.mxu1 %v355_v1 }
  0x20   :  { %300 = vmatpush3.bf16.msra.mxu1 %v299_v12 }
  0x21   :  { %301 = vmatprep.subr.bf16.mxu1 %v355_v1 }
  0x24   :  { %303 = vmatpush3.bf16.msra.mxu1 %v302_v15 }
  0x25   :  { %304 = vmatprep.subr.bf16.mxu1 %v355_v1 }
  0x28   :  { %306 = vmatpush3.bf16.msra.mxu1 %v305_v18 }
  0x29   :  { %307 = vmatprep.subr.bf16.mxu1 %v355_v1 }
  0x2c   :  { %309 = vmatpush3.bf16.msra.mxu1 %v308_v21 }
  0x2d   :  { %310 = vmatprep.subr.bf16.mxu1 %v355_v1 }
  0x30   :  { %312 = vmatpush3.bf16.msra.mxu1 %v311_v24 }
  0x31   :  { %313 = vmatprep.subr.bf16.mxu1 %v355_v1 }
  0x34   :  { %315 = vmatpush3.bf16.msra.mxu1 %v314_v27 }
  0xe9   :  { %v117_v29 = vpop.f32.mrb[0].mxu0 }
  0xea   :  { %v118_v30 = vadd.f32 %v228_v28, %v117_v29  ;;  %v256_v31 = vpop.f32.mrb[1].mxu0 }
  0xec   :  { %v121_v32 = vmax.f32 %v118_v30, 0.0 }
  0xee   :  { %290 = vmatmul.mubr.f32.vlgmr.msra.gmra.mrb[0].mxu1 %v121_v32 }
 0x1c1   :  { %v211_v34 = vpop.f32.mrb[0].mxu1 }
 0x1c2   :  { %v212_v35 = vadd.f32 %v231_v33, %v211_v34  ;;  %v291_v36 = vpop.f32.mrb[1].mxu1 }
 0x1c4   :  { %v232_v37 = vmul.f32 -1.442695, %v212_v35 }
 0x1c6   :  { %322 = vpow2.f32 %v232_v37 }
 0x1d0   :  { %v323_v38 = vpop.eup %322 }
 0x1d1   :  { %v218_v39 = vadd.f32 1.0, %v323_v38 }
 0x1d3   :  { %324 = vrcp.f32 %v218_v39 }
 0x1dd   :  { %v325_v40 = vpop.eup %324 }
 0x1de   :  { %222 = vst.msk [vmem:[%s418_s5] sm:$0xff] %vm221_vm3, %v325_v40 }
 0x1df   :  { %227 = vsyncpa [#allocation3], 1 }

</bundles_post_ra>
